<compile_context>
chip_gen: v7x
topology: tpu7x:2x2x1
jax: 0.10.0
libtpu: 0.0.40
codegen_flags: <defaults>
</compile_context>

<pallas_src>
import math
from functools import partial

import jax
import jax.numpy as jnp
from jax.experimental import pallas as pl
from jax.experimental.pallas import tpu as pltpu

# MXU operand dtype (f32 accumulation kept via preferred_element_type).
MXU_DTYPE = jnp.bfloat16
VMEM_LIMIT = 32 * 1024 * 1024          # safe on v5e/v6e/v7x
LN_EPS = 1e-6


def _compiler_params(n_parallel_axes):
    return pltpu.CompilerParams(
        dimension_semantics=("parallel",) * n_parallel_axes,
        vmem_limit_bytes=VMEM_LIMIT,
    )


def _row_tile(n, target=256):
    """Largest row tile <= target that divides n, is a multiple of 8 and, when
    possible, yields >= 2 grid steps so both TensorCores (v7x) get work."""
    candidates = [t for t in range(8, min(n, target) + 1, 8) if n % t == 0]
    if not candidates:
        return n
    multi = [t for t in candidates if n // t >= 2]
    return max(multi) if multi else max(candidates)


# ----------------------------------------------------------------------------
# Pallas kernels
# ----------------------------------------------------------------------------
def _ln_rows(x, g, b, eps):
    mean = jnp.mean(x, axis=-1, keepdims=True)
    var = jnp.mean((x - mean) ** 2, axis=-1, keepdims=True)
    return (x - mean) * jax.lax.rsqrt(var + eps) * g + b


def _layernorm_kernel(x_ref, g_ref, b_ref, o_ref, *, eps):
    x = x_ref[...].astype(jnp.float32)
    o_ref[...] = _ln_rows(x, g_ref[...], b_ref[...], eps).astype(o_ref.dtype)


def _matmul_kernel(x_ref, w_ref, bias_ref, o_ref):
    o_ref[...] = (
        jnp.dot(x_ref[...].astype(MXU_DTYPE), w_ref[...].astype(MXU_DTYPE),
                preferred_element_type=jnp.float32) + bias_ref[...]
    ).astype(o_ref.dtype)


def _ln_matmul_kernel(x_ref, g_ref, b_ref, w_ref, bias_ref, o_ref, *, eps):
    # o = LN(x) @ w + bias   (pre-LN fused into the projection)
    x = x_ref[...].astype(jnp.float32)
    y = _ln_rows(x, g_ref[...], b_ref[...], eps)
    o_ref[...] = (
        jnp.dot(y.astype(MXU_DTYPE), w_ref[...].astype(MXU_DTYPE),
                preferred_element_type=jnp.float32) + bias_ref[...]
    ).astype(o_ref.dtype)


def _ln_ffn_residual_kernel(x_ref, g_ref, b_ref, w1_ref, b1_ref, w2_ref, b2_ref,
                            o_ref, *, eps):
    # o = x + relu(LN(x) @ w1 + b1) @ w2 + b2
    x = x_ref[...].astype(jnp.float32)
    y = _ln_rows(x, g_ref[...], b_ref[...], eps)
    h = jnp.dot(y.astype(MXU_DTYPE), w1_ref[...].astype(MXU_DTYPE),
                preferred_element_type=jnp.float32) + b1_ref[...]
    h = jnp.maximum(h, 0.0)
    out = jnp.dot(h.astype(MXU_DTYPE), w2_ref[...].astype(MXU_DTYPE),
                  preferred_element_type=jnp.float32) + b2_ref[...]
    o_ref[...] = (x + out).astype(o_ref.dtype)


def _mha_core(q, k, v, mask, wo, bo, res, o_ref, *, nhead):
    # q (already scaled) [Sq, d] f32, k/v [Sk, d] f32, mask [Sq, Sk] (1 = keep).
    # Heads are split via static lane slices inside VMEM; output written
    # lane-dense as [Sq, d_model], then fused output projection + residual add.
    Sq, d = q.shape
    dk = d // nhead
    keep = mask > 0.5
    ctx_parts = []
    for h in range(nhead):
        lo, hi = h * dk, (h + 1) * dk
        qh = q[:, lo:hi].astype(MXU_DTYPE)
        kh = k[:, lo:hi].astype(MXU_DTYPE)
        vh = v[:, lo:hi].astype(MXU_DTYPE)
        s = jax.lax.dot_general(qh, kh, (((1,), (1,)), ((), ())),
                                preferred_element_type=jnp.float32)   # [Sq, Sk]
        s = jnp.where(keep, s, -1e9)
        mx = jnp.max(s, axis=-1, keepdims=True)
        p = jnp.exp(s - mx)
        p = p * pl.reciprocal(jnp.sum(p, axis=-1, keepdims=True), approx=True)
        ctx_parts.append(jnp.dot(p.astype(MXU_DTYPE), vh,
                                 preferred_element_type=jnp.float32))  # [Sq, dk]
    ctx = jnp.concatenate(ctx_parts, axis=-1)                          # [Sq, d]
    out = jnp.dot(ctx.astype(MXU_DTYPE), wo.astype(MXU_DTYPE),
                  preferred_element_type=jnp.float32) + bo
    o_ref[...] = (res + out).astype(o_ref.dtype)


def _self_attn_kernel(qkv_ref, m_ref, wo_ref, bo_ref, res_ref, o_ref,
                      *, nhead, scale):
    d = qkv_ref.shape[-1] // 3
    qkv = qkv_ref[...].astype(jnp.float32)
    q = qkv[:, :d] * scale           # fold softmax scale into q ([Sq,d] not [Sq,Sk])
    k = qkv[:, d:2 * d]
    v = qkv[:, 2 * d:]
    _mha_core(q, k, v, m_ref[...], wo_ref[...], bo_ref[...].astype(jnp.float32),
              res_ref[...].astype(jnp.float32), o_ref, nhead=nhead)


def _cross_attn_kernel(q_ref, kv_ref, m_ref, wo_ref, bo_ref, res_ref, o_ref,
                       *, nhead, scale):
    d = q_ref.shape[-1]
    q = q_ref[...].astype(jnp.float32) * scale
    kv = kv_ref[...].astype(jnp.float32)
    k = kv[:, :d]
    v = kv[:, d:]
    _mha_core(q, k, v, m_ref[...], wo_ref[...], bo_ref[...].astype(jnp.float32),
              res_ref[...].astype(jnp.float32), o_ref, nhead=nhead)


# ----------------------------------------------------------------------------
# Pallas wrappers (row-tiled, "parallel" grid axes)
# ----------------------------------------------------------------------------
def layer_norm(x2d, g, b, eps=LN_EPS):
    n, d = x2d.shape
    tm = _row_tile(n)
    return pl.pallas_call(
        partial(_layernorm_kernel, eps=eps),
        out_shape=jax.ShapeDtypeStruct((n, d), x2d.dtype),
        grid=(pl.cdiv(n, tm),),
        in_specs=[
            pl.BlockSpec((tm, d), lambda i: (i, 0)),
            pl.BlockSpec((1, d), lambda i: (0, 0)),
            pl.BlockSpec((1, d), lambda i: (0, 0)),
        ],
        out_specs=pl.BlockSpec((tm, d), lambda i: (i, 0)),
        compiler_params=_compiler_params(1),
    )(x2d, g, b)


def linear(x2d, w, bias):
    n, d_in = x2d.shape
    d_out = w.shape[1]
    tm = _row_tile(n)
    ce = pl.CostEstimate(flops=2 * n * d_in * d_out, transcendentals=0,
                         bytes_accessed=4 * (n * d_in + n * d_out + d_in * d_out))
    return pl.pallas_call(
        _matmul_kernel,
        out_shape=jax.ShapeDtypeStruct((n, d_out), x2d.dtype),
        grid=(pl.cdiv(n, tm),),
        in_specs=[
            pl.BlockSpec((tm, d_in), lambda i: (i, 0)),
            pl.BlockSpec((d_in, d_out), lambda i: (0, 0)),
            pl.BlockSpec((1, d_out), lambda i: (0, 0)),
        ],
        out_specs=pl.BlockSpec((tm, d_out), lambda i: (i, 0)),
        compiler_params=_compiler_params(1),
        cost_estimate=ce,
    )(x2d, w, bias)


def ln_linear(x2d, g, b, w, bias, eps=LN_EPS):
    n, d_in = x2d.shape
    d_out = w.shape[1]
    tm = _row_tile(n)
    ce = pl.CostEstimate(flops=2 * n * d_in * d_out + 8 * n * d_in,
                         transcendentals=0,
                         bytes_accessed=4 * (n * d_in + n * d_out + d_in * d_out))
    return pl.pallas_call(
        partial(_ln_matmul_kernel, eps=eps),
        out_shape=jax.ShapeDtypeStruct((n, d_out), x2d.dtype),
        grid=(pl.cdiv(n, tm),),
        in_specs=[
            pl.BlockSpec((tm, d_in), lambda i: (i, 0)),
            pl.BlockSpec((1, d_in), lambda i: (0, 0)),
            pl.BlockSpec((1, d_in), lambda i: (0, 0)),
            pl.BlockSpec((d_in, d_out), lambda i: (0, 0)),
            pl.BlockSpec((1, d_out), lambda i: (0, 0)),
        ],
        out_specs=pl.BlockSpec((tm, d_out), lambda i: (i, 0)),
        compiler_params=_compiler_params(1),
        cost_estimate=ce,
    )(x2d, g, b, w, bias)


def ln_ffn_residual(x2d, g, b, w1, b1, w2, b2, eps=LN_EPS):
    n, d = x2d.shape
    dff = w1.shape[1]
    # TODO(synk): for large d/dff on v7x (64 MiB VMEM) cap tm so tm*dff*4 +
    # weights + double-buffered I/O stays under ~48 MiB.
    tm = _row_tile(n)
    ce = pl.CostEstimate(flops=4 * n * d * dff + 8 * n * d, transcendentals=0,
                         bytes_accessed=4 * (2 * n * d + 2 * d * dff))
    return pl.pallas_call(
        partial(_ln_ffn_residual_kernel, eps=eps),
        out_shape=jax.ShapeDtypeStruct((n, d), x2d.dtype),
        grid=(pl.cdiv(n, tm),),
        in_specs=[
            pl.BlockSpec((tm, d), lambda i: (i, 0)),
            pl.BlockSpec((1, d), lambda i: (0, 0)),
            pl.BlockSpec((1, d), lambda i: (0, 0)),
            pl.BlockSpec((d, dff), lambda i: (0, 0)),
            pl.BlockSpec((1, dff), lambda i: (0, 0)),
            pl.BlockSpec((dff, d), lambda i: (0, 0)),
            pl.BlockSpec((1, d), lambda i: (0, 0)),
        ],
        out_specs=pl.BlockSpec((tm, d), lambda i: (i, 0)),
        compiler_params=_compiler_params(1),
        cost_estimate=ce,
    )(x2d, g, b, w1, b1, w2, b2)


def fused_self_attention(qkv, mask, wo, bo, resid, nhead):
    # qkv: [B, Sq, 3d], mask: [B, Sq, Sk], resid: [B, Sq, d]
    B, Sq, d3 = qkv.shape
    d = d3 // 3
    Sk = mask.shape[-1]
    scale = 1.0 / math.sqrt(d // nhead)
    return pl.pallas_call(
        partial(_self_attn_kernel, nhead=nhead, scale=scale),
        out_shape=jax.ShapeDtypeStruct((B, Sq, d), resid.dtype),
        grid=(B,),
        in_specs=[
            pl.BlockSpec((None, Sq, d3), lambda b: (b, 0, 0)),
            pl.BlockSpec((None, Sq, Sk), lambda b: (b, 0, 0)),
            pl.BlockSpec((d, d), lambda b: (0, 0)),
            pl.BlockSpec((1, d), lambda b: (0, 0)),
            pl.BlockSpec((None, Sq, d), lambda b: (b, 0, 0)),
        ],
        out_specs=pl.BlockSpec((None, Sq, d), lambda b: (b, 0, 0)),
        compiler_params=_compiler_params(1),
    )(qkv, mask, wo, bo, resid)


def fused_cross_attention(q, kv, mask, wo, bo, resid, nhead):
    # q: [B, Sq, d], kv: [B, Sk, 2d], mask: [B, Sq, Sk], resid: [B, Sq, d]
    B, Sq, d = q.shape
    Sk = kv.shape[1]
    scale = 1.0 / math.sqrt(d // nhead)
    return pl.pallas_call(
        partial(_cross_attn_kernel, nhead=nhead, scale=scale),
        out_shape=jax.ShapeDtypeStruct((B, Sq, d), resid.dtype),
        grid=(B,),
        in_specs=[
            pl.BlockSpec((None, Sq, d), lambda b: (b, 0, 0)),
            pl.BlockSpec((None, Sk, 2 * d), lambda b: (b, 0, 0)),
            pl.BlockSpec((None, Sq, Sk), lambda b: (b, 0, 0)),
            pl.BlockSpec((d, d), lambda b: (0, 0)),
            pl.BlockSpec((1, d), lambda b: (0, 0)),
            pl.BlockSpec((None, Sq, d), lambda b: (b, 0, 0)),
        ],
        out_specs=pl.BlockSpec((None, Sq, d), lambda b: (b, 0, 0)),
        compiler_params=_compiler_params(1),
    )(q, kv, mask, wo, bo, resid)


# ----------------------------------------------------------------------------
# Transformer modules (plain-JAX glue around the fused Pallas kernels)
# ----------------------------------------------------------------------------
def self_attention_block(p, ln, x, mask, nhead):
    # x + Wo(MHA(LN(x))) — 2 pallas_calls total
    B, S, d = x.shape
    qkv = ln_linear(x.reshape(B * S, d), ln["g"], ln["b"], p["wqkv"], p["bqkv"])
    qkv = qkv.reshape(B, S, 3 * d)
    return fused_self_attention(qkv, mask, p["wo"], p["bo"], x, nhead)


def cross_attention_block(p, ln, x, memory, mask, nhead):
    # x + Wo(MHA(LN(x), memory, memory)) — 3 pallas_calls total
    B, St, d = x.shape
    Ss = memory.shape[1]
    q = ln_linear(x.reshape(B * St, d), ln["g"], ln["b"], p["wq"], p["bq"])
    q = q.reshape(B, St, d)
    kv = linear(memory.reshape(B * Ss, d), p["wkv"], p["bkv"]).reshape(B, Ss, 2 * d)
    return fused_cross_attention(q, kv, mask, p["wo"], p["bo"], x, nhead)


def ffn_block(p, ln, x):
    B, S, d = x.shape
    y = ln_ffn_residual(x.reshape(B * S, d), ln["g"], ln["b"],
                        p["w1"], p["b1"], p["w2"], p["b2"])
    return y.reshape(B, S, d)


def apply_ln(p, x):
    B, S, d = x.shape
    return layer_norm(x.reshape(B * S, d), p["g"], p["b"]).reshape(B, S, d)


def encoder_layer_fwd(p, x, src_mask, nhead):
    x = self_attention_block(p["self_attn"], p["ln1"], x, src_mask, nhead)
    x = ffn_block(p["ff"], p["ln2"], x)
    return x


def decoder_layer_fwd(p, x, memory, mem_mask, tgt_mask, nhead):
    x = self_attention_block(p["self_attn"], p["ln1"], x, tgt_mask, nhead)
    x = cross_attention_block(p["src_attn"], p["ln2"], x, memory, mem_mask, nhead)
    x = ffn_block(p["ff"], p["ln3"], x)
    return x


def _prep_mask(mask, key_padding, B, Sq, Sk):
    if mask is None:
        m = jnp.ones((B, Sq, Sk), jnp.float32)
    else:
        m = jnp.asarray(mask, jnp.float32)
        while m.ndim < 3:
            m = m[None]
        m = jnp.broadcast_to(m, (B, Sq, Sk))
    if key_padding is not None:
        kp = jnp.asarray(key_padding, jnp.float32).reshape(B, 1, Sk)
        m = m * jnp.broadcast_to(kp, (B, Sq, Sk))
    return m


def transformer_forward(params, src, tgt, src_mask, tgt_mask,
                        memory_mask=None, src_padding_mask=None,
                        tgt_padding_mask=None, memory_key_padding_mask=None):
    nhead = params["nhead"]
    B, Ss, _ = src.shape
    St = tgt.shape[1]

    enc_mask = _prep_mask(src_mask, src_padding_mask, B, Ss, Ss)
    dec_self_mask = _prep_mask(tgt_mask, tgt_padding_mask, B, St, St)
    cross_base = memory_mask if memory_mask is not None else src_mask
    cross_mask = _prep_mask(cross_base, memory_key_padding_mask, B, St, Ss)

    # Encoder
    x = src
    for lp in params["encoder"]["layers"]:
        x = encoder_layer_fwd(lp, x, enc_mask, nhead)
    memory = apply_ln(params["encoder"]["norm"], x)

    # Decoder
    y = tgt
    for lp in params["decoder"]["layers"]:
        y = decoder_layer_fwd(lp, y, memory, cross_mask, dec_self_mask, nhead)
    return apply_ln(params["decoder"]["norm"], y)


# ----------------------------------------------------------------------------
# Deterministic parameter initialization (xavier-uniform weights, zero biases)
# ----------------------------------------------------------------------------
def _xavier(key, shape):
    fan_in, fan_out = shape[0], shape[1]
    limit = math.sqrt(6.0 / (fan_in + fan_out))
    return jax.random.uniform(key, shape, jnp.float32, -limit, limit)


def _init_self_mha(key, d_model):
    kq, kk, kv, ko = jax.random.split(key, 4)
    wqkv = jnp.concatenate([_xavier(kq, (d_model, d_model)),
                            _xavier(kk, (d_model, d_model)),
                            _xavier(kv, (d_model, d_model))], axis=1)
    return {
        "wqkv": wqkv, "bqkv": jnp.zeros((1, 3 * d_model), jnp.float32),
        "wo": _xavier(ko, (d_model, d_model)),
        "bo": jnp.zeros((1, d_model), jnp.float32),
    }


def _init_cross_mha(key, d_model):
    kq, kk, kv, ko = jax.random.split(key, 4)
    wkv = jnp.concatenate([_xavier(kk, (d_model, d_model)),
                           _xavier(kv, (d_model, d_model))], axis=1)
    return {
        "wq": _xavier(kq, (d_model, d_model)),
        "bq": jnp.zeros((1, d_model), jnp.float32),
        "wkv": wkv, "bkv": jnp.zeros((1, 2 * d_model), jnp.float32),
        "wo": _xavier(ko, (d_model, d_model)),
        "bo": jnp.zeros((1, d_model), jnp.float32),
    }


def _init_ff(key, d_model, dff):
    k1, k2 = jax.random.split(key)
    return {
        "w1": _xavier(k1, (d_model, dff)), "b1": jnp.zeros((1, dff), jnp.float32),
        "w2": _xavier(k2, (dff, d_model)), "b2": jnp.zeros((1, d_model), jnp.float32),
    }


def _init_ln(d_model):
    return {"g": jnp.ones((1, d_model), jnp.float32),
            "b": jnp.zeros((1, d_model), jnp.float32)}


def init_transformer_params(key, d_model, nhead, n_enc, n_dec, dff):
    params = {"nhead": nhead, "encoder": {"layers": []}, "decoder": {"layers": []}}
    for _ in range(n_enc):
        key, k1, k2 = jax.random.split(key, 3)
        params["encoder"]["layers"].append({
            "self_attn": _init_self_mha(k1, d_model),
            "ff": _init_ff(k2, d_model, dff),
            "ln1": _init_ln(d_model), "ln2": _init_ln(d_model),
        })
    params["encoder"]["norm"] = _init_ln(d_model)
    for _ in range(n_dec):
        key, k1, k2, k3 = jax.random.split(key, 4)
        params["decoder"]["layers"].append({
            "self_attn": _init_self_mha(k1, d_model),
            "src_attn": _init_cross_mha(k2, d_model),
            "ff": _init_ff(k3, d_model, dff),
            "ln1": _init_ln(d_model), "ln2": _init_ln(d_model), "ln3": _init_ln(d_model),
        })
    params["decoder"]["norm"] = _init_ln(d_model)
    return params


# ----------------------------------------------------------------------------
if __name__ == "__main__":
    d_model, nhead = 32, 4
    num_encoder_layers, num_decoder_layers = 2, 2
    dim_feedforward = 64
    B, S_src, S_tgt = 2, 8, 8

    root = jax.random.PRNGKey(0)
    kp, ks, kt = jax.random.split(root, 3)

    params = init_transformer_params(kp, d_model, nhead,
                                     num_encoder_layers, num_decoder_layers,
                                     dim_feedforward)

    src = jax.random.normal(ks, (B, S_src, d_model), jnp.float32)
    tgt = jax.random.normal(kt, (B, S_tgt, d_model), jnp.float32)

    # src_mask: all-ones; tgt_mask: causal (1 = attend)
    src_mask = jnp.ones((B, 1, S_src), jnp.float32)
    tgt_mask = jnp.tril(jnp.ones((S_tgt, S_tgt), jnp.float32))

    # TODO(synk): dropout RNG semantics of the PyTorch module are not
    # reproduced; dropout prob is treated as 0.0 (eval mode).
    out = transformer_forward(params, src, tgt, src_mask, tgt_mask)
    out = jax.block_until_ready(out)

    assert out.shape == (B, S_tgt, d_model)
    assert bool(jnp.all(jnp.isfinite(out)))
    print("KERNEL_OK")
</pallas_src>

<mosaic_0001>
module attributes {stable_mosaic.version = 11 : i64} {
  func.func @_ln_matmul_kernel(%arg0: i32, %arg1: memref<8x32xf32, #tpu.memory_space<vmem>>, %arg2: memref<1x32xf32, #tpu.memory_space<vmem>>, %arg3: memref<1x32xf32, #tpu.memory_space<vmem>>, %arg4: memref<32x96xf32, #tpu.memory_space<vmem>>, %arg5: memref<1x96xf32, #tpu.memory_space<vmem>>, %arg6: memref<8x96xf32, #tpu.memory_space<vmem>>) attributes {dimension_semantics = [#tpu.dimension_semantics<parallel>], iteration_bounds = array<i64: 2>, scalar_prefetch = 0 : i64, scratch_operands = 0 : i64, tpu.core_type = #tpu.core_type<tc>, window_params = [{transform_indices = @transform_0, window_bounds = array<i64: 8, 32>}, {pipeline_mode = #tpu.pipeline_mode<synchronous>, transform_indices = @transform_1, window_bounds = array<i64: 1, 32>}, {pipeline_mode = #tpu.pipeline_mode<synchronous>, transform_indices = @transform_2, window_bounds = array<i64: 1, 32>}, {pipeline_mode = #tpu.pipeline_mode<synchronous>, transform_indices = @transform_3, window_bounds = array<i64: 32, 96>}, {pipeline_mode = #tpu.pipeline_mode<synchronous>, transform_indices = @transform_4, window_bounds = array<i64: 1, 96>}, {transform_indices = @transform_5, window_bounds = array<i64: 8, 96>}]} {
    %c0 = arith.constant 0 : index
    %c0_0 = arith.constant 0 : index
    %0 = vector.load %arg1[%c0, %c0_0] : memref<8x32xf32, #tpu.memory_space<vmem>>, vector<8x32xf32>
    %c0_1 = arith.constant 0 : index
    %c0_2 = arith.constant 0 : index
    %1 = vector.load %arg2[%c0_1, %c0_2] : memref<1x32xf32, #tpu.memory_space<vmem>>, vector<1x32xf32>
    %c0_3 = arith.constant 0 : index
    %c0_4 = arith.constant 0 : index
    %2 = vector.load %arg3[%c0_3, %c0_4] : memref<1x32xf32, #tpu.memory_space<vmem>>, vector<1x32xf32>
    %cst = arith.constant dense<0.000000e+00> : vector<8xf32>
    %3 = vector.multi_reduction <add>, %0, %cst [1] : vector<8x32xf32> to vector<8xf32>
    %4 = vector.shape_cast %3 : vector<8xf32> to vector<8x1xf32>
    %cst_5 = arith.constant 3.200000e+01 : f32
    %5 = vector.broadcast %cst_5 : f32 to vector<8x1xf32>
    %6 = arith.divf %4, %5 : vector<8x1xf32>
    %7 = vector.broadcast %6 : vector<8x1xf32> to vector<8x32xf32>
    %8 = arith.subf %0, %7 : vector<8x32xf32>
    %9 = arith.mulf %8, %8 : vector<8x32xf32>
    %cst_6 = arith.constant dense<0.000000e+00> : vector<8xf32>
    %10 = vector.multi_reduction <add>, %9, %cst_6 [1] : vector<8x32xf32> to vector<8xf32>
    %11 = vector.shape_cast %10 : vector<8xf32> to vector<8x1xf32>
    %cst_7 = arith.constant 3.200000e+01 : f32
    %12 = vector.broadcast %cst_7 : f32 to vector<8x1xf32>
    %13 = arith.divf %11, %12 : vector<8x1xf32>
    %14 = vector.broadcast %6 : vector<8x1xf32> to vector<8x32xf32>
    %15 = arith.subf %0, %14 : vector<8x32xf32>
    %cst_8 = arith.constant 9.99999997E-7 : f32
    %16 = vector.broadcast %cst_8 : f32 to vector<8x1xf32>
    %17 = arith.addf %13, %16 : vector<8x1xf32>
    %18 = math.rsqrt %17 : vector<8x1xf32>
    %19 = vector.broadcast %18 : vector<8x1xf32> to vector<8x32xf32>
    %20 = arith.mulf %15, %19 : vector<8x32xf32>
    %21 = vector.broadcast %1 : vector<1x32xf32> to vector<8x32xf32>
    %22 = arith.mulf %20, %21 : vector<8x32xf32>
    %23 = vector.broadcast %2 : vector<1x32xf32> to vector<8x32xf32>
    %24 = arith.addf %22, %23 : vector<8x32xf32>
    %25 = arith.truncf %24 : vector<8x32xf32> to vector<8x32xbf16>
    %c0_9 = arith.constant 0 : index
    %c0_10 = arith.constant 0 : index
    %26 = vector.load %arg4[%c0_9, %c0_10] : memref<32x96xf32, #tpu.memory_space<vmem>>, vector<32x96xf32>
    %27 = arith.truncf %26 : vector<32x96xf32> to vector<32x96xbf16>
    %cst_11 = arith.constant dense<0.000000e+00> : vector<8x96xf32>
    %28 = tpu.matmul %25, %27, %cst_11 {dimension_numbers = #tpu.dot_dimension_numbers<[1], [0], [0], [1], [0, 0, 1, 1], [], []>} : vector<8x32xbf16>, vector<32x96xbf16>, vector<8x96xf32> -> vector<8x96xf32>
    %c0_12 = arith.constant 0 : index
    %c0_13 = arith.constant 0 : index
    %29 = vector.load %arg5[%c0_12, %c0_13] : memref<1x96xf32, #tpu.memory_space<vmem>>, vector<1x96xf32>
    %30 = vector.broadcast %29 : vector<1x96xf32> to vector<8x96xf32>
    %31 = arith.addf %28, %30 : vector<8x96xf32>
    %c0_14 = arith.constant 0 : index
    %c0_15 = arith.constant 0 : index
    %32 = vector.load %arg6[%c0_14, %c0_15] : memref<8x96xf32, #tpu.memory_space<vmem>>, vector<8x96xf32>
    tpu.vector_store %arg6[%c0_14, %c0_15], %31 {strides = array<i32>} : memref<8x96xf32, #tpu.memory_space<vmem>>, vector<8x96xf32>,
    return
  }
  func.func @transform_0(%arg0: i32) -> (i32, i32) {
    %c0_i32 = arith.constant 0 : i32
    %c0_i32_0 = arith.constant 0 : i32
    return %arg0, %c0_i32 : i32, i32
  }
  func.func @transform_1(%arg0: i32) -> (i32, i32) {
    %c0_i32 = arith.constant 0 : i32
    %c0_i32_0 = arith.constant 0 : i32
    %c0_i32_1 = arith.constant 0 : i32
    return %c0_i32, %c0_i32_0 : i32, i32
  }
  func.func @transform_2(%arg0: i32) -> (i32, i32) {
    %c0_i32 = arith.constant 0 : i32
    %c0_i32_0 = arith.constant 0 : i32
    %c0_i32_1 = arith.constant 0 : i32
    return %c0_i32, %c0_i32_0 : i32, i32
  }
  func.func @transform_3(%arg0: i32) -> (i32, i32) {
    %c0_i32 = arith.constant 0 : i32
    %c0_i32_0 = arith.constant 0 : i32
    %c0_i32_1 = arith.constant 0 : i32
    return %c0_i32, %c0_i32_0 : i32, i32
  }
  func.func @transform_4(%arg0: i32) -> (i32, i32) {
    %c0_i32 = arith.constant 0 : i32
    %c0_i32_0 = arith.constant 0 : i32
    %c0_i32_1 = arith.constant 0 : i32
    return %c0_i32, %c0_i32_0 : i32, i32
  }
  func.func @transform_5(%arg0: i32) -> (i32, i32) {
    %c0_i32 = arith.constant 0 : i32
    %c0_i32_0 = arith.constant 0 : i32
    return %arg0, %c0_i32 : i32, i32
  }
}

</mosaic_0001>

<bundles_post_ra>
// kernel: tpu_custom_call.1
= control target key start
LH: loop header
LB: loop body
LE: loop exit
PB: predicated region body
PF: predicated region fallthrough
CT: control target
= control target key end

     0   :  { %10 = vsyncpa [#allocation3], 0  ;;  %s912_s0 = inlined_call_operand.hbm [shape: f32[16,32], index: 0, kind: input, shape index: {}]   ;;  %s913_s1 = inlined_call_operand.vmem [shape: f32[1,32], index: 1, kind: input, shape index: {}]   ;;  %s914_s2 = inlined_call_operand.vmem [shape: f32[1,32], index: 2, kind: input, shape index: {}]   ;;  %s915_s3 = inlined_call_operand.hbm [shape: f32[32,96], index: 3, kind: input, shape index: {}]   ;;  %s916_s4 = inlined_call_operand.vmem [shape: f32[1,96], index: 4, kind: input, shape index: {}]   ;;  %s917_s5 = inlined_call_operand.hbm [shape: f32[16,96], index: 5, kind: output, shape index: {}]  }
   0x1   :  { %12 = vsyncpa [#allocation3 + $0x1], 0 }
   0x2   :  { %13 = vsyncpa [#allocation6], 0 }
   0x3   :  { %14 = vsyncpa [#allocation4], 0 }
   0x4   :  { %16 = vsyncpa [#allocation4 + $0x1], 0  ;;  %s700_s18 = smov 0   ;;  %s702_s19 = smov 0  }
   0x5   :  { %s704_s20 = smov 0   ;;  %s706_s21 = smov 0  }
   0x6 LB: > { %s721_s22 = sadd.s32 4294967295, %s661_s21   ;;  %s441_s23 = sadd.s32 4294967294, %s661_s21   ;;  %s661_s21 = sphi %s706_s21, %s937_s21   ;;  %s657_s20 = sphi %s704_s20, %s936_s20   ;;  %s653_s19 = sphi %s702_s19, %s935_s19   ;;  %s649_s18 = sphi %s700_s18, %s934_s18  }
   0x7   : > { %p42_p0 = scmp.ne.s32.totalorder %s653_s19, %s649_s18  ;;  %p918_p1 = scmp.eq.s32.totalorder %s721_s22, 0 }
   0x8   : > { %p156_p3 = scmp.eq.s32.totalorder %s441_s23, 1  ;;  %p442_p5 = scmp.ge.s32.totalorder %s661_s21, 1 }
   0x9   : > { %p730_p4 = por %p918_p1, %p42_p0  ;;  %p163_p7 = scmp.lt.s32.totalorder %s661_s21, 3 }
   0xa   : > { %p735_p6 = por %p156_p3, %p42_p0  ;;  %s663_s27 = smov [#allocation5]  }
   0xb   : > { %s921_s24 = scalar_select %p730_p4, 1, 0 }
   0xc   : > { %s922_s25 = scalar_select %p735_p6, 1, 0 }
   0xd   : > { %p740_p8 = pnand %p442_p5, %p163_p7  ;;  %s181_s28 = sshll.u32 %s663_s27, 4  ;;  %s744_s28 = int_to_ptr.vmem [resolvable:$true] %s181_s28 }
   0xe   : > { %s756_s30 = sadd.s32 1, %s661_s21   ;;  %s29_s6 = sadd.s32 1, %s657_s20 }
   0xf   : > { %s923_s26 = scalar_select %p740_p8, 1, 0 }
  0x10   : > { %p478_p9 = pneg %p740_p8  ;;  %s26_s7 = ssub.s32 %s661_s21, %s756_s30 }
  0x11   : > { %s533_s10 = scalar_lea.hbm %s915_s3, 512 }
  0x12   : > { %p751_p11 = pnand %p478_p9, %p918_p1  ;;  %p534_p12 = scmp.ne.s32.totalorder %s915_s3, %s533_s10 }
  0x13   : > { %p540_p5 = scmp.lt.u32.totalorder %s533_s10, %s915_s3 }
  0x14   : > { %p535_p13 = pneg %p751_p11 }
  0x16   : > { %p536_p0 = pnand %p535_p13, %p534_p12 }
  0x18   : > { %p537_p3 = pneg %p536_p0 }
  0x1a   : > { %p542_p7 = pnand %p540_p5, %p537_p3 }
  0x1c   : > { %545 = shalt.err (!%p542_p7)
}
  0x1d   : > { %s546_s15 = scalar_lea.vmem %s744_s28, 512  ;;  %p554_p2 = scmp.lt.s32.totalorder %s744_s28, %s744_s28 }
  0x1e   : > { %p547_p9 = scmp.ne.s32.totalorder %s744_s28, %s546_s15  ;;  %p555_p6 = scmp.lt.s32.totalorder %s546_s15, %s546_s15 }
  0x20   : > { %p549_p10 = pnand %p547_p9, %p535_p13  ;;  %p556_p4 = por %p555_p6, %p554_p2 }
  0x22   : > { %p550_p1 = pneg %p549_p10 }
  0x24   : > { %p557_p8 = pnand %p556_p4, %p550_p1 }
  0x26   : > { %560 = shalt.err (!%p557_p8)
}
  0x27   : > { %s664_s16 = smov 128   ;;  %s665_s17 = smov 8  }
  0x28   : > { %481 = dma.hbm_to_vmem [thread:$0]  (!%p751_p11), %s915_s3, 512, %s744_s28, [#allocation6], %s664_s16, %s664_s16, %s665_s17  }
  0x29   : > { %p27_p2 = scmp.eq.s32.totalorder %s26_s7, 0  ;;  %p36_p1 = scmp.ne.s32.totalorder %s657_s20, %s653_s19 }
  0x2a   : > { %p37_p4 = scmp.eq.s32.totalorder %s661_s21, 0  ;;  %p491_p6 = scmp.lt.s32.totalorder %s661_s21, 2 }
  0x2b   : > { %s787_s8 = scalar_select %p27_p2, %s657_s20, %s29_s6  }
  0x2c   : > { %p38_p8 = por %p37_p4, %p36_p1  ;;  %p925_p10 = scmp.eq.s32.totalorder %s721_s22, 1 }
  0x2d   : > { %s198_s10 = sand.u32 1, %s657_s20   ;;  %s446_s11 = sshll.u32 %s661_s21, 7 }
  0x2e   : > { %p791_p12 = por %p925_p10, %p36_p1  ;;  %s445_s12 = sshll.u32 %s198_s10, 3 }
  0x2f   : > { %s800_s14 = scalar_lea.hbm %s912_s0, %s446_s11  ;;  %s202_s28 = scalar_lea.vmem [#allocation2], %s445_s12 }
  0x30   : > { %s209_s6 = sshll.u32 %s202_s28, 4  ;;  %p802_p11 = pnand %p491_p6, %p38_p8  ;;  %s806_s6 = int_to_ptr.vmem [resolvable:$true] %s209_s6 }
  0x31   : > { %s199_s15 = scalar_lea.sflag [#allocation3], %s198_s10  ;;  %s561_s16 = scalar_lea.hbm %s800_s14, 128 }
  0x32   : > { %p562_p13 = scmp.ne.s32.totalorder %s800_s14, %s561_s16  ;;  %p563_p0 = pneg %p802_p11 }
  0x33   : > { %s566_s27 = scalar_lea.hbm %s912_s0, 256  ;;  %p567_p7 = scmp.lt.u32.totalorder %s800_s14, %s912_s0 }
  0x34   : > { %p564_p3 = pnand %p563_p0, %p562_p13  ;;  %p568_p9 = scmp.lt.u32.totalorder %s566_s27, %s561_s16 }
  0x35   : > { %p570_p1 = scmp.lt.u32.totalorder %s561_s16, %s800_s14 }
  0x36   : > { %p565_p5 = pneg %p564_p3  ;;  %p569_p2 = por %p568_p9, %p567_p7 }
  0x38   : > { %p571_p4 = por %p570_p1, %p569_p2 }
  0x3a   : > { %p572_p6 = pnand %p571_p4, %p565_p5 }
  0x3c   : > { %575 = shalt.err (!%p572_p6)
}
  0x3d   : > { %s576_s10 = scalar_lea.vmem %s806_s6, 128  ;;  %s666_s29 = smov [#allocation2]  }
  0x3e   : > { %p577_p8 = scmp.ne.s32.totalorder %s806_s6, %s576_s10  ;;  %s581_s13 = sshll.u32 %s666_s29, 4  ;;  %s582_s13 = int_to_ptr.vmem [resolvable:$false] %s581_s13 }
  0x3f   : > { %s583_s28 = scalar_lea.vmem %s582_s13, 256  ;;  %p584_p3 = scmp.lt.s32.totalorder %s806_s6, %s582_s13 }
  0x40   : > { %p579_p10 = pnand %p577_p8, %p563_p0  ;;  %p585_p7 = scmp.lt.s32.totalorder %s583_s28, %s576_s10 }
  0x42   : > { %p580_p13 = pneg %p579_p10  ;;  %p586_p9 = por %p585_p7, %p584_p3 }
  0x44   : > { %p587_p2 = pnand %p586_p9, %p580_p13 }
  0x46   : > { %590 = shalt.err (!%p587_p2)
}
  0x47   : > { %485 = dma.hbm_to_vmem [thread:$0]  (!%p802_p11), %s800_s14, 128, %s806_s6, %s199_s15  }
  0x48   : > { %p928_p5 = scmp.ne.s32.totalorder %s923_s26, 0 }
  0x49   : > { %s836_s16 = sand.u32 (!%p928_p5), 1, %s653_s19   ;;  %p929_p0 = scmp.ne.s32.totalorder (!%p928_p5), %s921_s24, 0 }
  0x4a   : > { %218 = sbr.rel (%p928_p5) target bundleno = 629 (0x275), region = 40  ;;  %s448_s17 = sshll.u32 (!%p928_p5), %s836_s16, 3 }
  0x4b   : > { %s221_s23 = scalar_lea.sflag (!%p928_p5), [#allocation3], %s836_s16  ;;  %s224_s27 = scalar_lea.vmem (!%p928_p5), [#allocation2], %s448_s17 }
  0x51   : > { %636 = dma.done.wait (%p929_p0), %s221_s23, 128  }
  0x52   : > { %638 = vsyncadd (%p929_p0), %s221_s23, 4294967168  ;;  %p930_p11 = scmp.eq.s32.totalorder %s721_s22, 0 }
  0x54   : > { %640 = dma.done.wait (%p930_p11), [#allocation6], 512   ;;  %p931_p1 = pmov %p930_p11 }
  0x55   : > { %vm259_vm0 = vcmask 261120   ;;  %v256_v0 = vld [vmem:[%s224_s27] sm:$0xff]  ;;  %v289_v7 = vld [vmem:[#allocation5] sm:$0xff]  ;;  %v290_v8 = vld [vmem:[#allocation5 + $0x8] sm:$0xff]  ;;  %v667_v10 = vmov 0.0   ;;  %vm668_vm1 = vmmov 0  }
  0x56   : > { %642 = vsyncadd (%p931_p1), [#allocation6], 4294966784  ;;  %v260_v1 = vsel %vm259_vm0, %v256_v0, 0.0  ;;  %v293_v9 = vpack.c.bf16 %v290_v8, %v289_v7  ;;  %462 = vmatprep.subr.bf16.mxu0 %v667_v10  ;;  %v291_v11 = vld [vmem:[#allocation5 + $0x10] sm:$0xff]  ;;  %v292_v12 = vld [vmem:[#allocation5 + $0x18] sm:$0xff]  ;;  %466 = vmatprep.mubr.msk.bf16.mxu0 %vm668_vm1, %v667_v10  ;;  %s456_s11 = sshll.u32 %s721_s22, 7 }
  0x57   : > { %261 = vadd.xlane.f32.xlu0 %v260_v1  ;;  %v294_v13 = vpack.c.bf16 %v292_v12, %v291_v11  ;;  %v451_v18 = vld [vmem:[%s913_s1] ss:$0 sm:$0xff]  ;;  %s254_s12 = scalar_lea.vmem [#allocation7], %s448_s17  ;;  %vm345_vm2 = vcmask 785408   ;;  %s868_s28 = scalar_lea.hbm %s917_s5, %s456_s11 }
  0x58   : > { %463 = vmatpush3.bf16.msra.mxu0 %v293_v9  ;;  %v452_v20 = vld [vmem:[%s914_s2] ss:$0 sm:$0xff]  ;;  %s361_s10 = sshll.u32 %s254_s12, 4  ;;  %s348_s22 = scalar_lea.sflag [#allocation4], %s836_s16  ;;  %s870_s10 = int_to_ptr.vmem [resolvable:$true] %s361_s10 }
  0x59   : > { %464 = vmatprep.subr.bf16.mxu0 %v667_v10  ;;  %v453_v24 = vld [vmem:[%s916_s4] ss:$0 sm:$0xff]  ;;  %s591_s17 = scalar_lea.vmem %s870_s10, 128  ;;  %s669_s23 = smov [#allocation7]  }
  0x5a   : > { %p592_p4 = scmp.ne.s32.totalorder %s870_s10, %s591_s17  ;;  %s595_s27 = sshll.u32 %s669_s23, 4  ;;  %s596_s27 = int_to_ptr.vmem [resolvable:$false] %s595_s27 }
  0x5b   : > { %s597_s24 = scalar_lea.vmem %s596_s27, 256  ;;  %p598_p10 = scmp.lt.s32.totalorder %s870_s10, %s596_s27 }
  0x5c   : > { %465 = vmatpush3.bf16.msra.mxu0 %v294_v13  ;;  %p593_p6 = pnand %p592_p4, %p791_p12  ;;  %p599_p13 = scmp.lt.s32.totalorder %s597_s24, %s591_s17 }
  0x5e   : > { %p594_p8 = pneg %p593_p6  ;;  %p600_p3 = por %p599_p13, %p598_p10 }
  0x60   : > { %p601_p7 = pnand %p600_p3, %p594_p8 }
  0xe4   : > { %v262_v2 = vpop.xlane.xlu0 %261 }
  0xe5   : > { %v264_v3 = vmul.f32 0.03125, %v262_v2 }
  0xe7   : > { %v265_v4 = vsub.f32 %v256_v0, %v264_v3 }
  0xe9   : > { %v266_v5 = vmul.f32 %v265_v4, %v265_v4 }
  0xeb   : > { %v267_v6 = vsel %vm259_vm0, %v266_v5, 0.0 }
  0xec   : > { %268 = vadd.xlane.f32.xlu0 %v267_v6 }
 0x179   : > { %v269_v14 = vpop.xlane.xlu0 %268 }
 0x17a   : > { %v270_v15 = vmul.f32 0.03125, %v269_v14 }
 0x17c   : > { %v271_v16 = vadd.f32 1e-06, %v270_v15 }
 0x17e   : > { %531 = vrsqrt.f32 %v271_v16 }
 0x188   : > { %v532_v17 = vpop.eup %531 }
 0x189   : > { %v273_v19 = vmul.f32 %v532_v17, %v265_v4 }
 0x18b   : > { %v280_v21 = vmul.f32 %v451_v18, %v273_v19 }
 0x18d   : > { %v287_v22 = vadd.f32 %v452_v20, %v280_v21 }
 0x18f   : > { %v288_v23 = vpack.c.bf16 %v287_v22, %v287_v22 }
 0x191   : > { %467 = vmatmul.mubr.msk.bf16.vlgmr.msra.gmra.mrb[0].mxu0 %vm259_vm0, %v288_v23 }
 0x264   : > { %v339_v25 = vpop.f32.mrb[0].mxu0 }
 0x265   : > { %v340_v26 = vadd.f32 %v453_v24, %v339_v25  ;;  %v468_v27 = vpop.f32.mrb[1].mxu0 }
 0x266   : > { %v342_v28 = vpop.f32.mrb[2].mxu0 }
 0x267   : > { %v469_v29 = vpop.f32.mrb[3].mxu0  ;;  %346 = vst.msk [vmem:[%s254_s12] sm:$0xff] %vm345_vm2, %v340_v26 }
 0x268   : > { %604 = shalt.err (!%p601_p7)
}
 0x269   : > { %s605_s16 = scalar_lea.hbm %s868_s28, 128  ;;  %s609_s6 = scalar_lea.hbm %s917_s5, 256 }
 0x26a   : > { %p606_p9 = scmp.ne.s32.totalorder %s868_s28, %s605_s16  ;;  %p610_p0 = scmp.lt.u32.totalorder %s868_s28, %s917_s5 }
 0x26b   : > { %p611_p11 = scmp.lt.u32.totalorder %s609_s6, %s605_s16  ;;  %p613_p4 = scmp.lt.u32.totalorder %s605_s16, %s868_s28 }
 0x26c   : > { %p607_p2 = pnand %p606_p9, %p791_p12 }
 0x26d   : > { %p612_p1 = por %p611_p11, %p610_p0 }
 0x26e   : > { %p608_p5 = pneg %p607_p2 }
 0x26f   : > { %p614_p6 = por %p613_p4, %p612_p1 }
 0x271   : > { %p615_p8 = pnand %p614_p6, %p608_p5 }
 0x273   : > { %618 = shalt.err (!%p615_p8)
}
 0x274   : > { %476 = dma.vmem_to_hbm [thread:$0]  (%p791_p12), %s870_s10, 128, %s868_s28, %s348_s22  }
 0x275 PF: > { %s373_s11 = sand.u32 1, %s649_s18   ;;  %p932_p10 = scmp.ne.s32.totalorder %s922_s25, 0 }
 0x276   : > { %p933_p13 = scmp.ge.s32.totalorder %s661_s21, 2  ;;  %s374_s12 = scalar_lea.sflag [#allocation4], %s373_s11 }
 0x278   : > { %p487_p3 = pnand %p933_p13, %p932_p10 }
 0x27a   : > { %644 = dma.done.wait (!%p487_p3), %s374_s12, 128  }
 0x27b   : > { %646 = vsyncadd (!%p487_p3), %s374_s12, 4294967168  ;;  %p19_p7 = scmp.ge.s32.totalorder %s756_s30, 4   ;;  %s934_s18 = smov %s653_s19 }
 0x27c   : > { %s935_s19 = smov %s657_s20  ;;  %s936_s20 = smov %s787_s8 }
 0x27d   : > { %s937_s21 = smov %s756_s30  ;;  %21 = sbr.rel (!%p19_p7) target bundleno = 6 (0x6), region = 89 }
 0x284   :  { %379 = vsyncpa [#allocation3], 1 }
 0x285   :  { %381 = vsyncpa [#allocation3 + $0x1], 1 }
 0x286   :  { %382 = vsyncpa [#allocation6], 1 }
 0x287   :  { %383 = vsyncpa [#allocation4], 1 }
 0x288   :  { %385 = vsyncpa [#allocation4 + $0x1], 1 }

</bundles_post_ra>
